<compile_context>
chip_gen: v7x
topology: tpu7x:2x2x1
jax: 0.10.0
libtpu: 0.0.40
codegen_flags: <defaults>
</compile_context>

<pallas_src>
import functools

import jax
import jax.numpy as jnp
from jax import lax
from jax.experimental import pallas as pl
from jax.experimental.pallas import tpu as pltpu


def _select_topk_sum(loss, row_iota, mxu_colsum, *, k, n, chunk_d):
    """Per-column sum of the k largest values via iterative select-and-mask.

    Used only when min(k, n-k) is small.  Picks the k largest directly, or
    (when k > N/2) subtracts the N-k smallest from the full column sum.
    """
    biggest = k <= n - k
    sel_rounds = k if biggest else n - k
    reduce_fn = jnp.max if biggest else jnp.min
    mask_val = jnp.float32(-jnp.inf if biggest else jnp.inf)

    # Issue the MXU column total before the selection loop so it drains while
    # the VPU/XLU rounds run (only needed on the complement path).
    total = None if biggest else mxu_colsum(loss)

    def body(carry):
        w, a = carry
        m = reduce_fn(w, axis=0, keepdims=True)            # (1, chunk_d)
        a = a + m
        # Remove exactly one (the first) occurrence per column -> tie-safe,
        # matches torch.topk's value multiset.
        sel = jnp.where(w == m, row_iota, n)
        first = jnp.min(sel, axis=0, keepdims=True)        # (1, chunk_d)
        w = jnp.where(row_iota == first, mask_val, w)
        return w, a

    a0 = jnp.zeros((1, chunk_d), jnp.float32)
    if sel_rounds <= 8:
        # Small & static: fully unrolled keeps the LLO scheduler happy.
        w, a = loss, a0
        for _ in range(sel_rounds):
            w, a = body((w, a))
    else:
        # unroll=2: lets round i's reduce overlap round i-1's masking.
        _, a = lax.fori_loop(0, sel_rounds, lambda _, c: body(c), (loss, a0),
                             unroll=2)
    return a if biggest else total - a


def _threshold_topk_sum(loss, ones8, mxu_colsum, *, k, n, chunk_d):
    """Per-column sum of the k largest values via bit-pattern binary search.

    loss >= 0, so its f32 bit pattern (viewed as int32) is monotone in value.
    Build, MSB->LSB, the largest bit pattern T with count(loss >= float(T)) >= k;
    float(T) is then exactly the k-th largest value per column.  31 rounds of
    (compare + MXU ones-matmul count), i.e. O(31*N) instead of O(rounds*N).
    """
    k_f = jnp.float32(k)

    def bit_round(_, carry):
        thresh, bit = carry
        trial = thresh | bit                                    # (1, chunk_d)
        trial_f = pltpu.bitcast(trial, jnp.float32)
        ge = (loss >= trial_f).astype(jnp.float32)              # (n, chunk_d)
        # Per-column count on the otherwise-idle MXU (exact: 0/1 values,
        # f32 accumulation).
        cnt = jnp.dot(ones8, ge, preferred_element_type=jnp.float32)[0:1, :]
        thresh = jnp.where(cnt >= k_f, trial, thresh)
        return thresh, jnp.right_shift(bit, 1)

    thresh0 = jnp.zeros((1, chunk_d), jnp.int32)
    thresh, _ = lax.fori_loop(0, 31, bit_round,
                              (thresh0, jnp.int32(1 << 30)), unroll=2)
    kth = pltpu.bitcast(thresh, jnp.float32)                    # (1, chunk_d)
    gt_mask = loss > kth
    sum_gt = mxu_colsum(jnp.where(gt_mask, loss, 0.0))
    cnt_gt = mxu_colsum(gt_mask.astype(jnp.float32))
    # All values strictly above the k-th value, plus (k - count(>kth)) copies
    # of it (tie handling matches torch.topk's value multiset).
    return sum_gt + (k_f - cnt_gt) * kth


def _topk_bce_kernel(pred_ref, gt_ref, partial_ref, *, k, n, d_total, tile_d,
                     chunk_d, use_threshold):
    i = pl.program_id(0)
    rounds = min(k, n - k)

    # Hoisted constants (JAX does not CSE broadcast_in_dim -> build once).
    need_mxu = use_threshold or rounds == 0 or k > n - k
    ones8 = jnp.ones((8, n), jnp.float32) if need_mxu else None
    row_iota = (lax.broadcasted_iota(jnp.int32, (n, chunk_d), 0)
                if (not use_threshold and rounds > 0) else None)
    lane_iota = lax.broadcasted_iota(jnp.int32, (1, chunk_d), 1)

    def mxu_colsum(m):
        # (8, n) @ (n, chunk_d): all 8 result rows are identical column sums;
        # issues on the MXU (vex slot), leaving VPU/XLU free.
        return jnp.dot(ones8, m, preferred_element_type=jnp.float32)[0:1, :]

    for c in range(tile_d // chunk_d):
        sl = pl.ds(c * chunk_d, chunk_d)
        x = pred_ref[:, sl].astype(jnp.float32)
        y = gt_ref[:, sl].astype(jnp.float32)

        # Numerically stable BCE-with-logits (matches torch): always > 0.
        loss = jnp.maximum(x, 0.0) - x * y + jnp.log1p(jnp.exp(-jnp.abs(x)))

        # Zero out lanes beyond the true D extent (partial last tile).  All-
        # zero columns contribute exactly 0 on every path below (loss >= 0).
        valid = lane_iota < (d_total - i * tile_d - c * chunk_d)
        loss = jnp.where(valid, loss, 0.0)

        if rounds == 0:
            acc = mxu_colsum(loss)                       # k == N: keep all rows
        elif not use_threshold:
            acc = _select_topk_sum(loss, row_iota, mxu_colsum,
                                   k=k, n=n, chunk_d=chunk_d)
        else:
            acc = _threshold_topk_sum(loss, ones8, mxu_colsum,
                                      k=k, n=n, chunk_d=chunk_d)

        partial_ref[:, :, sl] = acc.reshape(1, 1, chunk_d)


def topk_bce_loss(pred, gt, p=0.7):
    """pred, gt: (N, D) logits / targets (f32 or bf16). Returns scalar f32 loss."""
    n, d = pred.shape
    assert gt.shape == (n, d)
    k = int(n * p)                      # matches torch's int() truncation
    assert 1 <= k <= n, "k must satisfy 1 <= k <= N"

    itemsize = pred.dtype.itemsize + gt.dtype.itemsize
    d_lanes = pl.cdiv(d, 128) * 128

    # tile_d: biggest lane tile such that the two double-buffered inputs
    # (2 buffers x (pred+gt) x n x tile_d bytes) fit a 32 MiB budget -- safe on
    # v7x's 64 MiB VMEM and well under v5e/v6e's 128 MiB.  Cap at 2048 lanes
    # (inner loop chunks compute anyway) and clamp to the padded D.
    in_budget = 32 * 1024 * 1024
    max_by_vmem = max(128, in_budget // (2 * n * itemsize))
    tile_d = min(2048, d_lanes, max_by_vmem)
    if d_lanes >= 256:
        # Keep >= 2 grid steps so both v7x TensorCores get work on the
        # "parallel" axis (neutral on single-core v5e/v6e).
        tile_d = min(tile_d, pl.cdiv(d_lanes, 2 * 128) * 128)
    tile_d = max(128, (tile_d // 128) * 128)
    num_tiles = pl.cdiv(d, tile_d)

    # <=256-lane compute chunks keep the per-round mutable working set
    # register-resident inside the selection loops.
    chunk_d = 256 if tile_d % 256 == 0 else 128

    rounds = min(k, n - k)
    use_threshold = rounds > 16         # iterative path only for small rounds

    kernel = functools.partial(_topk_bce_kernel, k=k, n=n, d_total=d,
                               tile_d=tile_d, chunk_d=chunk_d,
                               use_threshold=use_threshold)

    partials = pl.pallas_call(
        kernel,
        out_shape=jax.ShapeDtypeStruct((num_tiles, 1, tile_d), jnp.float32),
        grid_spec=pltpu.PrefetchScalarGridSpec(
            num_scalar_prefetch=0,
            grid=(num_tiles,),
            in_specs=[
                pl.BlockSpec((n, tile_d), lambda i: (0, i)),
                pl.BlockSpec((n, tile_d), lambda i: (0, i)),
            ],
            out_specs=pl.BlockSpec((1, 1, tile_d), lambda i: (i, 0, 0)),
        ),
        compiler_params=pltpu.CompilerParams(
            # Each grid step owns its own output block -> megacore-safe.
            dimension_semantics=("parallel",),
            # 48 MiB: above v5e's 16 MiB / v6e-v7x's 32 MiB default scoped
            # limits, below v7x's 64 MiB physical VMEM.
            vmem_limit_bytes=48 * 1024 * 1024,
        ),
    )(pred, gt)

    # Final cross-lane reduce + mean happen outside the kernel.
    return jnp.sum(partials) / jnp.float32(k * d)


def _reference(pred, gt, p=0.7):
    n = pred.shape[0]
    k = int(n * p)
    x = pred.astype(jnp.float32)
    y = gt.astype(jnp.float32)
    loss = jnp.maximum(x, 0.0) - x * y + jnp.log1p(jnp.exp(-jnp.abs(x)))
    vals = lax.top_k(loss.T, k)[0]          # top-k along dim 0
    return jnp.mean(vals)


if __name__ == "__main__":
    base_key = jax.random.PRNGKey(0)

    def run_case(n, d, p, dtype):
        key = jax.random.fold_in(base_key, n * 131 + d)
        k1, k2 = jax.random.split(key)
        pred = (jax.random.normal(k1, (n, d), dtype=jnp.float32) * 2.0).astype(dtype)
        gt = jax.random.uniform(k2, (n, d), dtype=jnp.float32).astype(dtype)
        out = jax.block_until_ready(topk_bce_loss(pred, gt, p=p))
        ref = _reference(pred, gt, p=p)
        assert jnp.allclose(out, ref, rtol=1e-4, atol=1e-5), (n, d, dtype, out, ref)

    # Small N -> iterative select path; D not a lane multiple -> masking path.
    run_case(16, 200, 0.7, jnp.float32)
    # Larger N -> bit-pattern threshold-search path (rounds > 16).
    run_case(128, 512, 0.7, jnp.float32)
    # bf16 inputs accepted (halves HBM traffic); compute stays f32.
    run_case(128, 512, 0.7, jnp.bfloat16)

    print("KERNEL_OK")
</pallas_src>

<mosaic_0001>
module attributes {stable_mosaic.version = 11 : i64} {
  func.func @_topk_bce_kernel(%arg0: i32, %arg1: memref<16x128xf32, #tpu.memory_space<vmem>>, %arg2: memref<16x128xf32, #tpu.memory_space<vmem>>, %arg3: memref<1x1x128xf32, #tpu.memory_space<vmem>>) attributes {dimension_semantics = [#tpu.dimension_semantics<parallel>], iteration_bounds = array<i64: 2>, scalar_prefetch = 0 : i64, scratch_operands = 0 : i64, tpu.core_type = #tpu.core_type<tc>, window_params = [{transform_indices = @transform_0, window_bounds = array<i64: 16, 128>}, {transform_indices = @transform_1, window_bounds = array<i64: 16, 128>}, {transform_indices = @transform_2, window_bounds = array<i64: 1, 1, 128>}]} {
    %cst = arith.constant 1.000000e+00 : f32
    %0 = vector.broadcast %cst : f32 to vector<8x16xf32>
    %1 = tpu.iota {dimensions = array<i32: 0>} : vector<16x128xi32>
    %2 = tpu.iota {dimensions = array<i32: 1>} : vector<1x128xi32>
    %c0 = arith.constant 0 : index
    %c0_0 = arith.constant 0 : index
    %3 = vector.load %arg1[%c0, %c0_0] : memref<16x128xf32, #tpu.memory_space<vmem>>, vector<16x128xf32>
    %c0_1 = arith.constant 0 : index
    %c0_2 = arith.constant 0 : index
    %4 = vector.load %arg2[%c0_1, %c0_2] : memref<16x128xf32, #tpu.memory_space<vmem>>, vector<16x128xf32>
    %cst_3 = arith.constant 0.000000e+00 : f32
    %5 = vector.broadcast %cst_3 : f32 to vector<16x128xf32>
    %6 = arith.maximumf %3, %5 : vector<16x128xf32>
    %7 = arith.mulf %3, %4 : vector<16x128xf32>
    %8 = arith.subf %6, %7 : vector<16x128xf32>
    %9 = math.absf %3 : vector<16x128xf32>
    %cst_4 = arith.constant 0.000000e+00 : f32
    %10 = vector.broadcast %cst_4 : f32 to vector<16x128xf32>
    %11 = arith.subf %10, %9 : vector<16x128xf32>
    %12 = math.exp %11 : vector<16x128xf32>
    %13 = math.log1p %12 : vector<16x128xf32>
    %14 = arith.addf %8, %13 : vector<16x128xf32>
    %c128_i32 = arith.constant 128 : i32
    %15 = arith.muli %arg0, %c128_i32 : i32
    %c200_i32 = arith.constant 200 : i32
    %16 = arith.subi %c200_i32, %15 : i32
    %c0_i32 = arith.constant 0 : i32
    %17 = arith.subi %16, %c0_i32 : i32
    %18 = vector.broadcast %17 : i32 to vector<1x128xi32>
    %19 = arith.cmpi slt, %2, %18 : vector<1x128xi32>
    %cst_5 = arith.constant 0.000000e+00 : f32
    %20 = vector.shape_cast %19 : vector<1x128xi1> to vector<1x128xi1>
    %21 = vector.broadcast %20 : vector<1x128xi1> to vector<16x128xi1>
    %22 = vector.broadcast %cst_5 : f32 to vector<16x128xf32>
    %23 = arith.select %21, %14, %22 : vector<16x128xi1>, vector<16x128xf32>
    %cst_6 = arith.constant dense<0.000000e+00> : vector<8x128xf32>
    %24 = tpu.matmul %0, %23, %cst_6 {dimension_numbers = #tpu.dot_dimension_numbers<[1], [0], [0], [1], [0, 0, 1, 1], [], []>} : vector<8x16xf32>, vector<16x128xf32>, vector<8x128xf32> -> vector<8x128xf32>
    %25 = vector.extract_strided_slice %24 {offsets = [0, 0], sizes = [1, 128], strides = [1, 1]} : vector<8x128xf32> to vector<1x128xf32>
    %cst_7 = arith.constant 0.000000e+00 : f32
    %26 = vector.broadcast %cst_7 : f32 to vector<1x128xf32>
    %cst_8 = arith.constant dense<0x7F800000> : vector<128xf32>
    %27 = vector.multi_reduction <minimumf>, %23, %cst_8 [0] : vector<16x128xf32> to vector<128xf32>
    %28 = vector.shape_cast %27 : vector<128xf32> to vector<1x128xf32>
    %29 = arith.addf %26, %28 : vector<1x128xf32>
    %30 = vector.broadcast %28 : vector<1x128xf32> to vector<16x128xf32>
    %31 = arith.cmpf oeq, %23, %30 : vector<16x128xf32>
    %c16_i32 = arith.constant 16 : i32
    %32 = vector.broadcast %c16_i32 : i32 to vector<16x128xi32>
    %33 = arith.select %31, %1, %32 : vector<16x128xi1>, vector<16x128xi32>
    %cst_9 = arith.constant dense<2147483647> : vector<128xi32>
    %34 = vector.multi_reduction <minsi>, %33, %cst_9 [0] : vector<16x128xi32> to vector<128xi32>
    %35 = vector.shape_cast %34 : vector<128xi32> to vector<1x128xi32>
    %36 = vector.broadcast %35 : vector<1x128xi32> to vector<16x128xi32>
    %37 = arith.cmpi eq, %1, %36 : vector<16x128xi32>
    %cst_10 = arith.constant 0x7F800000 : f32
    %38 = vector.broadcast %cst_10 : f32 to vector<16x128xf32>
    %39 = arith.select %37, %38, %23 : vector<16x128xi1>, vector<16x128xf32>
    %cst_11 = arith.constant dense<0x7F800000> : vector<128xf32>
    %40 = vector.multi_reduction <minimumf>, %39, %cst_11 [0] : vector<16x128xf32> to vector<128xf32>
    %41 = vector.shape_cast %40 : vector<128xf32> to vector<1x128xf32>
    %42 = arith.addf %29, %41 : vector<1x128xf32>
    %43 = vector.broadcast %41 : vector<1x128xf32> to vector<16x128xf32>
    %44 = arith.cmpf oeq, %39, %43 : vector<16x128xf32>
    %c16_i32_12 = arith.constant 16 : i32
    %45 = vector.broadcast %c16_i32_12 : i32 to vector<16x128xi32>
    %46 = arith.select %44, %1, %45 : vector<16x128xi1>, vector<16x128xi32>
    %cst_13 = arith.constant dense<2147483647> : vector<128xi32>
    %47 = vector.multi_reduction <minsi>, %46, %cst_13 [0] : vector<16x128xi32> to vector<128xi32>
    %48 = vector.shape_cast %47 : vector<128xi32> to vector<1x128xi32>
    %49 = vector.broadcast %48 : vector<1x128xi32> to vector<16x128xi32>
    %50 = arith.cmpi eq, %1, %49 : vector<16x128xi32>
    %cst_14 = arith.constant 0x7F800000 : f32
    %51 = vector.broadcast %cst_14 : f32 to vector<16x128xf32>
    %52 = arith.select %50, %51, %39 : vector<16x128xi1>, vector<16x128xf32>
    %cst_15 = arith.constant dense<0x7F800000> : vector<128xf32>
    %53 = vector.multi_reduction <minimumf>, %52, %cst_15 [0] : vector<16x128xf32> to vector<128xf32>
    %54 = vector.shape_cast %53 : vector<128xf32> to vector<1x128xf32>
    %55 = arith.addf %42, %54 : vector<1x128xf32>
    %56 = vector.broadcast %54 : vector<1x128xf32> to vector<16x128xf32>
    %57 = arith.cmpf oeq, %52, %56 : vector<16x128xf32>
    %c16_i32_16 = arith.constant 16 : i32
    %58 = vector.broadcast %c16_i32_16 : i32 to vector<16x128xi32>
    %59 = arith.select %57, %1, %58 : vector<16x128xi1>, vector<16x128xi32>
    %cst_17 = arith.constant dense<2147483647> : vector<128xi32>
    %60 = vector.multi_reduction <minsi>, %59, %cst_17 [0] : vector<16x128xi32> to vector<128xi32>
    %61 = vector.shape_cast %60 : vector<128xi32> to vector<1x128xi32>
    %62 = vector.broadcast %61 : vector<1x128xi32> to vector<16x128xi32>
    %63 = arith.cmpi eq, %1, %62 : vector<16x128xi32>
    %cst_18 = arith.constant 0x7F800000 : f32
    %64 = vector.broadcast %cst_18 : f32 to vector<16x128xf32>
    %65 = arith.select %63, %64, %52 : vector<16x128xi1>, vector<16x128xf32>
    %cst_19 = arith.constant dense<0x7F800000> : vector<128xf32>
    %66 = vector.multi_reduction <minimumf>, %65, %cst_19 [0] : vector<16x128xf32> to vector<128xf32>
    %67 = vector.shape_cast %66 : vector<128xf32> to vector<1x128xf32>
    %68 = arith.addf %55, %67 : vector<1x128xf32>
    %69 = vector.broadcast %67 : vector<1x128xf32> to vector<16x128xf32>
    %70 = arith.cmpf oeq, %65, %69 : vector<16x128xf32>
    %c16_i32_20 = arith.constant 16 : i32
    %71 = vector.broadcast %c16_i32_20 : i32 to vector<16x128xi32>
    %72 = arith.select %70, %1, %71 : vector<16x128xi1>, vector<16x128xi32>
    %cst_21 = arith.constant dense<2147483647> : vector<128xi32>
    %73 = vector.multi_reduction <minsi>, %72, %cst_21 [0] : vector<16x128xi32> to vector<128xi32>
    %74 = vector.shape_cast %73 : vector<128xi32> to vector<1x128xi32>
    %75 = vector.broadcast %74 : vector<1x128xi32> to vector<16x128xi32>
    %76 = arith.cmpi eq, %1, %75 : vector<16x128xi32>
    %cst_22 = arith.constant 0x7F800000 : f32
    %77 = vector.broadcast %cst_22 : f32 to vector<16x128xf32>
    %78 = arith.select %76, %77, %65 : vector<16x128xi1>, vector<16x128xf32>
    %cst_23 = arith.constant dense<0x7F800000> : vector<128xf32>
    %79 = vector.multi_reduction <minimumf>, %78, %cst_23 [0] : vector<16x128xf32> to vector<128xf32>
    %80 = vector.shape_cast %79 : vector<128xf32> to vector<1x128xf32>
    %81 = arith.addf %68, %80 : vector<1x128xf32>
    %82 = arith.subf %25, %81 : vector<1x128xf32>
    %83 = vector.shape_cast %82 : vector<1x128xf32> to vector<1x1x128xf32>
    %c0_24 = arith.constant 0 : index
    %c0_25 = arith.constant 0 : index
    %c0_26 = arith.constant 0 : index
    %84 = vector.load %arg3[%c0_24, %c0_25, %c0_26] : memref<1x1x128xf32, #tpu.memory_space<vmem>>, vector<1x1x128xf32>
    tpu.vector_store %arg3[%c0_24, %c0_25, %c0_26], %83 {strides = array<i32>} : memref<1x1x128xf32, #tpu.memory_space<vmem>>, vector<1x1x128xf32>,
    return
  }
  func.func @transform_0(%arg0: i32) -> (i32, i32) {
    %c0_i32 = arith.constant 0 : i32
    %c0_i32_0 = arith.constant 0 : i32
    return %c0_i32, %arg0 : i32, i32
  }
  func.func @transform_1(%arg0: i32) -> (i32, i32) {
    %c0_i32 = arith.constant 0 : i32
    %c0_i32_0 = arith.constant 0 : i32
    return %c0_i32, %arg0 : i32, i32
  }
  func.func @transform_2(%arg0: i32) -> (i32, i32, i32) {
    %c0_i32 = arith.constant 0 : i32
    %c0_i32_0 = arith.constant 0 : i32
    %c0_i32_1 = arith.constant 0 : i32
    return %arg0, %c0_i32, %c0_i32_0 : i32, i32, i32
  }
}

</mosaic_0001>

<bundles_post_ra>
// kernel: tpu_custom_call.1
= control target key start
LH: loop header
LB: loop body
LE: loop exit
PB: predicated region body
PF: predicated region fallthrough
CT: control target
= control target key end

     0   :  { %7 = vsyncpa [#allocation3], 0  ;;  %s1044_s0 = inlined_call_operand.hbm [shape: f32[16,200], index: 0, kind: input, shape index: {}]   ;;  %s1045_s1 = inlined_call_operand.hbm [shape: f32[16,200], index: 1, kind: input, shape index: {}]   ;;  %s1046_s2 = inlined_call_operand.hbm [shape: f32[2,1,128], index: 2, kind: output, shape index: {}]  }
   0x1   :  { %9 = vsyncpa [#allocation3 + $0x1], 0 }
   0x2   :  { %10 = vsyncpa [#allocation6], 0 }
   0x3   :  { %12 = vsyncpa [#allocation6 + $0x1], 0 }
   0x4   :  { %13 = vsyncpa [#allocation4], 0 }
   0x5   :  { %15 = vsyncpa [#allocation4 + $0x1], 0  ;;  %s798_s9 = smov 0   ;;  %s800_s10 = smov 0  }
   0x6   :  { %s802_s11 = smov 0   ;;  %s804_s12 = smov 0  }
   0x7 LB: > { %s819_s13 = sadd.s32 4294967295, %s771_s12   ;;  %s544_s14 = sadd.s32 4294967294, %s771_s12   ;;  %s771_s12 = sphi %s804_s12, %s1063_s12   ;;  %s767_s11 = sphi %s802_s11, %s1062_s11   ;;  %s763_s10 = sphi %s800_s10, %s1061_s10   ;;  %s759_s9 = sphi %s798_s9, %s1060_s9  }
   0x8   : > { %s823_s15 = sadd.s32 1, %s771_s12   ;;  %s28_s16 = sadd.s32 1, %s767_s11 }
   0x9   : > { %s25_s17 = ssub.s32 %s771_s12, %s823_s15  ;;  %p35_p0 = scmp.ne.s32.totalorder %s767_s11, %s763_s10 }
   0xa   : > { %p26_p1 = scmp.eq.s32.totalorder %s25_s17, 0  ;;  %p36_p2 = scmp.eq.s32.totalorder %s771_s12, 0 }
   0xb   : > { %p41_p3 = scmp.ne.s32.totalorder %s763_s10, %s759_s9  ;;  %p42_p4 = scmp.eq.s32.totalorder %s819_s13, 0 }
   0xc   : > { %s835_s18 = scalar_select %p26_p1, %s767_s11, %s28_s16  }
   0xd   : > { %p837_p5 = por %p36_p2, %p35_p0  ;;  %p841_p6 = por %p42_p4, %p41_p3 }
   0xe   : > { %p91_p7 = scmp.eq.s32.totalorder %s819_s13, 1  ;;  %p97_p8 = scmp.eq.s32.totalorder %s544_s14, 1 }
   0xf   : > { %s1050_s20 = scalar_select %p841_p6, 1, 0 }
  0x10   : > { %p592_p10 = scmp.lt.s32.totalorder %s771_s12, 2  ;;  %p848_p11 = por %p91_p7, %p35_p0 }
  0x11   : > { %p852_p12 = por %p97_p8, %p41_p3  ;;  %s857_s23 = sand.u32 1, %s767_s11  }
  0x12   : > { %s1051_s21 = scalar_select %p848_p11, 1, 0 }
  0x13   : > { %s1052_s22 = scalar_select %p852_p12, 1, 0 }
  0x14   : > { %s548_s24 = sshll.u32 %s771_s12, 7  ;;  %s547_s25 = sshll.u32 %s857_s23, 4 }
  0x15   : > { %s866_s28 = scalar_lea.hbm %s1044_s0, %s548_s24  ;;  %s121_s29 = scalar_lea.vmem [#allocation2], %s547_s25 }
  0x16   : > { %s127_s30 = sshll.u32 %s121_s29, 4  ;;  %p872_p13 = pnand %p592_p10, %p837_p5  ;;  %s876_s30 = int_to_ptr.vmem [resolvable:$true] %s127_s30 }
  0x17   : > { %s118_s4 = scalar_lea.sflag [#allocation3], %s857_s23  ;;  %s641_s5 = scalar_lea.hbm %s866_s28, 256 }
  0x18   : > { %p642_p1 = scmp.ne.s32.totalorder %s866_s28, %s641_s5  ;;  %p643_p2 = pneg %p872_p13 }
  0x19   : > { %s646_s8 = scalar_lea.hbm %s1044_s0, 512  ;;  %p647_p5 = scmp.lt.u32.totalorder %s866_s28, %s1044_s0 }
  0x1a   : > { %p644_p3 = pnand %p643_p2, %p642_p1  ;;  %p648_p7 = scmp.lt.u32.totalorder %s646_s8, %s641_s5 }
  0x1b   : > { %p650_p10 = scmp.lt.u32.totalorder %s641_s5, %s866_s28 }
  0x1c   : > { %p645_p4 = pneg %p644_p3  ;;  %p649_p8 = por %p648_p7, %p647_p5 }
  0x1e   : > { %p651_p9 = por %p650_p10, %p649_p8 }
  0x20   : > { %p652_p0 = pnand %p651_p9, %p645_p4 }
  0x22   : > { %655 = shalt.err (!%p652_p0)
}
  0x23   : > { %s656_s17 = scalar_lea.vmem %s876_s30, 256  ;;  %s773_s19 = smov [#allocation2]  }
  0x24   : > { %p657_p1 = scmp.ne.s32.totalorder %s876_s30, %s656_s17  ;;  %s661_s26 = sshll.u32 %s773_s19, 4  ;;  %s662_s26 = int_to_ptr.vmem [resolvable:$false] %s661_s26 }
  0x25   : > { %s663_s27 = scalar_lea.vmem %s662_s26, 512  ;;  %p664_p11 = scmp.lt.s32.totalorder %s876_s30, %s662_s26 }
  0x26   : > { %p659_p3 = pnand %p657_p1, %p643_p2  ;;  %p665_p5 = scmp.lt.s32.totalorder %s663_s27, %s656_s17 }
  0x28   : > { %p660_p12 = pneg %p659_p3  ;;  %p666_p7 = por %p665_p5, %p664_p11 }
  0x2a   : > { %p667_p8 = pnand %p666_p7, %p660_p12 }
  0x2c   : > { %670 = shalt.err (!%p667_p8)
}
  0x2d   : > { %s774_s29 = smov 256   ;;  %s775_s5 = smov 128  }
  0x2e   : > { %s776_s6 = smov 8   ;;  %p155_p9 = scmp.lt.s32.totalorder %s771_s12, 3 }
  0x2f   : > { %584 = dma.hbm_to_vmem [thread:$0]  (!%p872_p13), %s866_s28, 256, %s876_s30, %s118_s4, %s774_s29, %s775_s5, %s776_s6  }
  0x30   : > { %s916_s14 = scalar_lea.hbm %s1045_s1, %s548_s24  ;;  %p1054_p11 = scmp.ge.s32.totalorder %s771_s12, 1 }
  0x31   : > { %s141_s17 = scalar_lea.vmem [#allocation5], %s547_s25  ;;  %s138_s28 = scalar_lea.sflag [#allocation6], %s857_s23 }
  0x32   : > { %p920_p12 = pnand %p1054_p11, %p155_p9  ;;  %s147_s19 = sshll.u32 %s141_s17, 4  ;;  %s926_s19 = int_to_ptr.vmem [resolvable:$true] %s147_s19 }
  0x33   : > { %s671_s30 = scalar_lea.hbm %s916_s14, 256  ;;  %s676_s26 = scalar_lea.hbm %s1045_s1, 512 }
  0x34   : > { %p672_p0 = scmp.ne.s32.totalorder %s916_s14, %s671_s30  ;;  %p677_p1 = scmp.lt.u32.totalorder %s916_s14, %s1045_s1 }
  0x35   : > { %p678_p3 = scmp.lt.u32.totalorder %s676_s26, %s671_s30  ;;  %p680_p7 = scmp.lt.u32.totalorder %s671_s30, %s916_s14 }
  0x36   : > { %p674_p4 = pnand %p672_p0, %p643_p2 }
  0x37   : > { %p679_p5 = por %p678_p3, %p677_p1 }
  0x38   : > { %p675_p10 = pneg %p674_p4 }
  0x39   : > { %p681_p8 = por %p680_p7, %p679_p5 }
  0x3b   : > { %p682_p9 = pnand %p681_p8, %p675_p10 }
  0x3d   : > { %685 = shalt.err (!%p682_p9)
}
  0x3e   : > { %s686_s25 = scalar_lea.vmem %s926_s19, 256  ;;  %s777_s8 = smov [#allocation5]  }
  0x3f   : > { %p687_p11 = scmp.ne.s32.totalorder %s926_s19, %s686_s25  ;;  %s691_s17 = sshll.u32 %s777_s8, 4  ;;  %s692_s17 = int_to_ptr.vmem [resolvable:$false] %s691_s17 }
  0x40   : > { %s693_s24 = scalar_lea.vmem %s692_s17, 512  ;;  %p694_p6 = scmp.lt.s32.totalorder %s926_s19, %s692_s17 }
  0x41   : > { %p689_p0 = pnand %p687_p11, %p643_p2  ;;  %p695_p1 = scmp.lt.s32.totalorder %s693_s24, %s686_s25 }
  0x43   : > { %p690_p4 = pneg %p689_p0  ;;  %p696_p3 = por %p695_p1, %p694_p6 }
  0x45   : > { %p697_p5 = pnand %p696_p3, %p690_p4 }
  0x47   : > { %700 = shalt.err (!%p697_p5)
}
  0x48   : > { %587 = dma.hbm_to_vmem [thread:$0]  (!%p872_p13), %s916_s14, 256, %s926_s19, %s138_s28, %s774_s29, %s775_s5, %s776_s6  }
  0x49   : > { %159 = sbr.rel (%p920_p12) target bundleno = 353 (0x161), region = 28  ;;  %s960_s30 = sand.u32 (!%p920_p12), 1, %s763_s10  }
  0x4a   : > { %s552_s4 = sshll.u32 (!%p920_p12), %s960_s30, 4  ;;  %s162_s26 = scalar_lea.sflag (!%p920_p12), [#allocation3], %s960_s30 }
  0x4b   : > { %s165_s3 = scalar_lea.vmem (!%p920_p12), [#allocation2], %s552_s4  ;;  %p1056_p6 = scmp.ne.s32.totalorder (!%p920_p12), %s1050_s20, 0 }
  0x50   : > { %746 = dma.done.wait (%p1056_p6), %s162_s26, 256  }
  0x51   : > { %748 = vsyncadd (%p1056_p6), %s162_s26, 4294967040  ;;  %s171_s23 = scalar_lea.sflag [#allocation6], %s960_s30  ;;  %s174_s29 = scalar_lea.vmem [#allocation5], %s552_s4 }
  0x52   : > { %750 = dma.done.wait (%p1056_p6), %s171_s23, 256  }
  0x53   : > { %752 = vsyncadd (%p1056_p6), %s171_s23, 4294967040  ;;  %v778_v0 = vmov 0.0|0.0   ;;  %vm779_vm0 = vmmov 0   ;;  %v780_v1 = vmov 0.0   ;;  %v204_v2 = vld [vmem:[%s165_s3] sm:$0xff]  ;;  %v205_v3 = vld [vmem:[%s165_s3 + $0x8] sm:$0xff]  ;;  %v199_v18 = vlaneseq }
  0x54   : > { %571 = vmatprep.subr.bf16.mxu0 %v778_v0  ;;  %568 = vmatprep.mubr.msk.f32.mxu0 %vm779_vm0, %v780_v1  ;;  %v214_v4 = vand.u32 2147483647, %v204_v2  ;;  %v215_v5 = vand.u32 2147483647, %v205_v3  ;;  %v206_v16 = vld [vmem:[%s174_s29] sm:$0xff]  ;;  %v207_v17 = vld [vmem:[%s174_s29 + $0x8] sm:$0xff] }
  0x55   : > { %s554_s20 = sshll.u32 %s819_s13, 7  ;;  %v208_v20 = vmax.f32 %v204_v2, 0.0  ;;  %v210_v21 = vmul.f32 %v206_v16, %v204_v2  ;;  %v209_v24 = vmax.f32 %v205_v3, 0.0  ;;  %v211_v25 = vmul.f32 %v207_v17, %v205_v3  ;;  %s558_s6 = sshll.u32 %s819_s13, 4 }
  0x56   : > { %v216_v6 = vsub.f32 0.0, %v214_v4  ;;  %v217_v7 = vsub.f32 0.0, %v215_v5  ;;  %s243_s5 = ssub.s32 200, %s554_s20  ;;  %v203_v27 = vand.u32 127, %v199_v18  ;;  %vm250_vm5 = vcmask 130048   ;;  %s198_s14 = scalar_lea.vmem [#allocation7], %s960_s30 }
  0x57   : > { %v212_v30 = vsub.f32 %v208_v20, %v210_v21  ;;  %v244_v32 = vstv %s243_s5  ;;  %v213_v34 = vsub.f32 %v209_v24, %v211_v25  ;;  %v781_v47 = vmov 1.0   ;;  %s455_s16 = sshll.u32 %s198_s14, 4  ;;  %s1000_s27 = scalar_lea.hbm %s1046_s2, %s558_s6  ;;  %s1002_s16 = int_to_ptr.vmem [resolvable:$true] %s455_s16 }
  0x58   : > { %v218_v8 = vmul.f32 1.442695, %v216_v6  ;;  %v220_v9 = vmul.f32 1.442695, %v217_v7  ;;  %vm245_vm3 = vcmp.lt.s32.totalorder %v203_v27, %v244_v32  ;;  %v974_v49 = vshrl.u32 %v199_v18, 7  ;;  %s443_s7 = scalar_lea.sflag [#allocation4], %s960_s30 }
  0x59   : > { %vm573_vm4 = vmpackc.low %vm245_vm3, %vm245_vm3  ;;  %s701_s25 = scalar_lea.vmem %s1002_s16, 16  ;;  %p1057_p2 = scmp.ne.s32.totalorder %s1051_s21, 0 }
  0x5a   : > { %633 = vpow2.f32 %v218_v8  ;;  %v977_v52 = vadd.s32 8, %v974_v49  ;;  %p702_p13 = scmp.ne.s32.totalorder %s1002_s16, %s701_s25  ;;  %s782_s13 = smov [#allocation7]  }
  0x5b   : > { %635 = vpow2.f32 %v220_v9  ;;  %s705_s8 = sshll.u32 %s782_s13, 4  ;;  %s706_s8 = int_to_ptr.vmem [resolvable:$false] %s705_s8 }
  0x5c   : > { %p703_p12 = pnand %p702_p13, %p1057_p2  ;;  %s707_s17 = scalar_lea.vmem %s706_s8, 32 }
  0x5d   : > { %p708_p7 = scmp.lt.s32.totalorder %s1002_s16, %s706_s8  ;;  %p709_p8 = scmp.lt.s32.totalorder %s707_s17, %s701_s25 }
  0x5e   : > { %p704_p10 = pneg %p703_p12 }
  0x5f   : > { %p710_p9 = por %p709_p8, %p708_p7 }
  0x61   : > { %p711_p11 = pnand %p710_p9, %p704_p10 }
  0x64   : > { %v634_v10 = vpop.eup %633 }
  0x65   : > { %v636_v11 = vpop.eup %635  ;;  %v222_v12 = vadd.f32 1.0, %v634_v10  ;;  %v225_v14 = vmul.f32 -0.5, %v634_v10  ;;  %v228_v22 = vand.u32 2147483647, %v634_v10 }
  0x66   : > { %v231_v13 = vadd.f32 1.0, %v636_v11  ;;  %v234_v15 = vmul.f32 -0.5, %v636_v11  ;;  %v237_v26 = vand.u32 2147483647, %v636_v11 }
  0x67   : > { %637 = vlog2.f32 %v222_v12  ;;  %v226_v19 = vadd.f32 1.0, %v225_v14  ;;  %vm229_vm1 = vcmp.lt.f32.partialorder %v228_v22, 0.0004427343 }
  0x68   : > { %639 = vlog2.f32 %v231_v13  ;;  %v235_v23 = vadd.f32 1.0, %v234_v15  ;;  %vm238_vm2 = vcmp.lt.f32.partialorder %v237_v26, 0.0004427343 }
  0x69   : > { %v227_v28 = vmul.f32 %v634_v10, %v226_v19 }
  0x6a   : > { %v236_v31 = vmul.f32 %v636_v11, %v235_v23 }
  0x71   : > { %v638_v29 = vpop.eup %637 }
  0x72   : > { %v640_v33 = vpop.eup %639  ;;  %v224_v35 = vmul.f32 0.6931472, %v638_v29 }
  0x73   : > { %v233_v36 = vmul.f32 0.6931472, %v640_v33 }
  0x74   : > { %v230_v37 = vsel %vm229_vm1, %v227_v28, %v224_v35 }
  0x75   : > { %v239_v38 = vsel %vm238_vm2, %v236_v31, %v233_v36  ;;  %v240_v39 = vadd.f32 %v230_v37, %v212_v30 }
  0x76   : > { %v241_v40 = vadd.f32 %v239_v38, %v213_v34 }
  0x77   : > { %v248_v41 = vsel %vm245_vm3, %v240_v39, 0.0 }
  0x78   : > { %v249_v42 = vsel %vm245_vm3, %v241_v40, 0.0  ;;  %v572_v43 = vpack.c.bf16 %v241_v40, %v240_v39 }
  0x79   : > { %v324_v44 = vmin.f32 %v248_v41, %v249_v42 }
  0x7a   : > { %574 = vmatpush3.bf16.msk.msra.mxu0 %vm573_vm4, %v572_v43 }
  0x7b   : > { %v325_v45 = vrot.slane %v324_v44, 4 }
  0x7d   : > { %v326_v46 = vmin.f32 %v324_v44, %v325_v45  ;;  %569 = vmatmul.mubr.msk.f32.vlgmr.msra.gmra.mrb[0].mxu0 %vm250_vm5, %v781_v47 }
  0x7f   : > { %v327_v48 = vrot.slane %v326_v46, 2 }
  0x81   : > { %v328_v50 = vmin.f32 %v326_v46, %v327_v48 }
  0x83   : > { %v329_v51 = vrot.slane %v328_v50, 1 }
  0x85   : > { %v330_v53 = vmin.f32 %v328_v50, %v329_v51 }
  0x87   : > { %vm332_vm6 = vcmp.eq.f32.partialorder %v248_v41, %v330_v53  ;;  %vm333_vm7 = vcmp.eq.f32.partialorder %v249_v42, %v330_v53 }
  0x88   : > { %v334_v54 = vsel %vm332_vm6, %v974_v49, 16  ;;  %v335_v55 = vsel %vm333_vm7, %v977_v52, 16 }
  0x89   : > { %vm336_vm8 = vcmp.lt.s32.totalorder %v334_v54, %v335_v55 }
  0x8a   : > { %v337_v56 = vsel %vm336_vm8, %v334_v54, %v335_v55 }
  0x8b   : > { %v338_v57 = vrot.slane %v337_v56, 4 }
  0x8d   : > { %vm339_vm9 = vcmp.lt.s32.totalorder %v337_v56, %v338_v57 }
  0x8e   : > { %v340_v58 = vsel %vm339_vm9, %v337_v56, %v338_v57 }
  0x8f   : > { %v341_v59 = vrot.slane %v340_v58, 2 }
  0x91   : > { %vm342_vm10 = vcmp.lt.s32.totalorder %v340_v58, %v341_v59 }
  0x92   : > { %v343_v60 = vsel %vm342_vm10, %v340_v58, %v341_v59 }
  0x93   : > { %v344_v61 = vrot.slane %v343_v60, 1 }
  0x95   : > { %vm345_vm11 = vcmp.lt.s32.totalorder %v343_v60, %v344_v61 }
  0x96   : > { %v346_v62 = vsel %vm345_vm11, %v343_v60, %v344_v61 }
  0x97   : > { %vm347_vm12 = vcmp.eq.s32.totalorder %v974_v49, %v346_v62  ;;  %vm348_vm13 = vcmp.eq.s32.totalorder %v977_v52, %v346_v62 }
  0x98   : > { %v349_v63 = vsel %vm347_vm12, inf, %v248_v41  ;;  %v350_v0 = vsel %vm348_vm13, inf, %v249_v42 }
  0x99   : > { %v351_v1 = vmin.f32 %v349_v63, %v350_v0 }
  0x9b   : > { %v352_v2 = vrot.slane %v351_v1, 4 }
  0x9d   : > { %v353_v3 = vmin.f32 %v351_v1, %v352_v2 }
  0x9f   : > { %v354_v4 = vrot.slane %v353_v3, 2 }
  0xa1   : > { %v355_v5 = vmin.f32 %v353_v3, %v354_v4 }
  0xa3   : > { %v356_v6 = vrot.slane %v355_v5, 1 }
  0xa5   : > { %v357_v7 = vmin.f32 %v355_v5, %v356_v6 }
  0xa7   : > { %vm359_vm14 = vcmp.eq.f32.partialorder %v349_v63, %v357_v7  ;;  %vm360_vm15 = vcmp.eq.f32.partialorder %v350_v0, %v357_v7  ;;  %v358_v28 = vadd.f32 %v357_v7, %v330_v53 }
  0xa8   : > { %v361_v8 = vsel %vm359_vm14, %v974_v49, 16  ;;  %v362_v9 = vsel %vm360_vm15, %v977_v52, 16 }
  0xa9   : > { %vm363_vm0 = vcmp.lt.s32.totalorder %v361_v8, %v362_v9 }
  0xaa   : > { %v364_v10 = vsel %vm363_vm0, %v361_v8, %v362_v9 }
  0xab   : > { %v365_v11 = vrot.slane %v364_v10, 4 }
  0xad   : > { %vm366_vm1 = vcmp.lt.s32.totalorder %v364_v10, %v365_v11 }
  0xae   : > { %v367_v12 = vsel %vm366_vm1, %v364_v10, %v365_v11 }
  0xaf   : > { %v368_v13 = vrot.slane %v367_v12, 2 }
  0xb1   : > { %vm369_vm2 = vcmp.lt.s32.totalorder %v367_v12, %v368_v13 }
  0xb2   : > { %v370_v14 = vsel %vm369_vm2, %v367_v12, %v368_v13 }
  0xb3   : > { %v371_v15 = vrot.slane %v370_v14, 1 }
  0xb5   : > { %vm372_vm3 = vcmp.lt.s32.totalorder %v370_v14, %v371_v15 }
  0xb6   : > { %v373_v16 = vsel %vm372_vm3, %v370_v14, %v371_v15 }
  0xb7   : > { %vm374_vm4 = vcmp.eq.s32.totalorder %v974_v49, %v373_v16  ;;  %vm375_vm5 = vcmp.eq.s32.totalorder %v977_v52, %v373_v16 }
  0xb8   : > { %v376_v17 = vsel %vm374_vm4, inf, %v349_v63  ;;  %v377_v18 = vsel %vm375_vm5, inf, %v350_v0 }
  0xb9   : > { %v378_v19 = vmin.f32 %v376_v17, %v377_v18 }
  0xbb   : > { %v379_v20 = vrot.slane %v378_v19, 4 }
  0xbd   : > { %v380_v21 = vmin.f32 %v378_v19, %v379_v20 }
  0xbf   : > { %v381_v22 = vrot.slane %v380_v21, 2 }
  0xc1   : > { %v382_v23 = vmin.f32 %v380_v21, %v381_v22 }
  0xc3   : > { %v383_v24 = vrot.slane %v382_v23, 1 }
  0xc5   : > { %v384_v25 = vmin.f32 %v382_v23, %v383_v24 }
  0xc7   : > { %vm386_vm6 = vcmp.eq.f32.partialorder %v376_v17, %v384_v25  ;;  %vm387_vm7 = vcmp.eq.f32.partialorder %v377_v18, %v384_v25  ;;  %v385_v30 = vadd.f32 %v384_v25, %v358_v28 }
  0xc8   : > { %v388_v26 = vsel %vm386_vm6, %v974_v49, 16  ;;  %v389_v27 = vsel %vm387_vm7, %v977_v52, 16 }
  0xc9   : > { %vm390_vm8 = vcmp.lt.s32.totalorder %v388_v26, %v389_v27 }
  0xca   : > { %v391_v29 = vsel %vm390_vm8, %v388_v26, %v389_v27 }
  0xcb   : > { %v392_v31 = vrot.slane %v391_v29, 4 }
  0xcd   : > { %vm393_vm9 = vcmp.lt.s32.totalorder %v391_v29, %v392_v31 }
  0xce   : > { %v394_v32 = vsel %vm393_vm9, %v391_v29, %v392_v31 }
  0xcf   : > { %v395_v33 = vrot.slane %v394_v32, 2 }
  0xd1   : > { %vm396_vm10 = vcmp.lt.s32.totalorder %v394_v32, %v395_v33 }
  0xd2   : > { %v397_v34 = vsel %vm396_vm10, %v394_v32, %v395_v33 }
  0xd3   : > { %v398_v35 = vrot.slane %v397_v34, 1 }
  0xd5   : > { %vm399_vm11 = vcmp.lt.s32.totalorder %v397_v34, %v398_v35 }
  0xd6   : > { %v400_v36 = vsel %vm399_vm11, %v397_v34, %v398_v35 }
  0xd7   : > { %vm401_vm12 = vcmp.eq.s32.totalorder %v974_v49, %v400_v36  ;;  %vm402_vm13 = vcmp.eq.s32.totalorder %v977_v52, %v400_v36 }
  0xd8   : > { %v403_v37 = vsel %vm401_vm12, inf, %v376_v17  ;;  %v404_v38 = vsel %vm402_vm13, inf, %v377_v18 }
  0xd9   : > { %v405_v39 = vmin.f32 %v403_v37, %v404_v38 }
  0xdb   : > { %v406_v40 = vrot.slane %v405_v39, 4 }
  0xdd   : > { %v407_v41 = vmin.f32 %v405_v39, %v406_v40 }
  0xdf   : > { %v408_v42 = vrot.slane %v407_v41, 2 }
  0xe1   : > { %v409_v43 = vmin.f32 %v407_v41, %v408_v42 }
  0xe3   : > { %v410_v44 = vrot.slane %v409_v43, 1 }
  0xe5   : > { %v411_v45 = vmin.f32 %v409_v43, %v410_v44 }
  0xe7   : > { %v412_v46 = vadd.f32 %v411_v45, %v385_v30  ;;  %vm413_vm14 = vcmp.eq.f32.partialorder %v403_v37, %v411_v45  ;;  %vm414_vm15 = vcmp.eq.f32.partialorder %v404_v38, %v411_v45 }
  0xe8   : > { %v415_v47 = vsel %vm413_vm14, %v974_v49, 16  ;;  %v416_v48 = vsel %vm414_vm15, %v977_v52, 16 }
  0xe9   : > { %vm417_vm0 = vcmp.lt.s32.totalorder %v415_v47, %v416_v48 }
  0xea   : > { %v418_v50 = vsel %vm417_vm0, %v415_v47, %v416_v48 }
  0xeb   : > { %v419_v51 = vrot.slane %v418_v50, 4 }
  0xed   : > { %vm420_vm1 = vcmp.lt.s32.totalorder %v418_v50, %v419_v51 }
  0xee   : > { %v421_v53 = vsel %vm420_vm1, %v418_v50, %v419_v51 }
  0xef   : > { %v422_v54 = vrot.slane %v421_v53, 2 }
  0xf1   : > { %vm423_vm2 = vcmp.lt.s32.totalorder %v421_v53, %v422_v54 }
  0xf2   : > { %v424_v55 = vsel %vm423_vm2, %v421_v53, %v422_v54 }
  0xf3   : > { %v425_v56 = vrot.slane %v424_v55, 1 }
  0xf5   : > { %vm426_vm3 = vcmp.lt.s32.totalorder %v424_v55, %v425_v56 }
  0xf6   : > { %v427_v57 = vsel %vm426_vm3, %v424_v55, %v425_v56 }
  0xf7   : > { %vm428_vm4 = vcmp.eq.s32.totalorder %v974_v49, %v427_v57  ;;  %vm429_vm5 = vcmp.eq.s32.totalorder %v977_v52, %v427_v57 }
  0xf8   : > { %v430_v58 = vsel %vm428_vm4, inf, %v403_v37  ;;  %v431_v59 = vsel %vm429_vm5, inf, %v404_v38 }
  0xf9   : > { %v432_v60 = vmin.f32 %v430_v58, %v431_v59 }
  0xfb   : > { %v433_v61 = vrot.slane %v432_v60, 4 }
  0xfd   : > { %v434_v62 = vmin.f32 %v432_v60, %v433_v61 }
  0xff   : > { %v435_v63 = vrot.slane %v434_v62, 2 }
 0x101   : > { %v436_v0 = vmin.f32 %v434_v62, %v435_v63 }
 0x103   : > { %v437_v1 = vrot.slane %v436_v0, 1 }
 0x105   : > { %v438_v2 = vmin.f32 %v436_v0, %v437_v1 }
 0x107   : > { %v439_v3 = vadd.f32 %v438_v2, %v412_v46 }
 0x150   : > { %v320_v4 = vpop.f32.mrb[0].mxu0 }
 0x151   : > { %v440_v5 = vsub.f32 %v320_v4, %v439_v3  ;;  %v570_v49 = vpop.f32.mrb[1].mxu0 }
 0x153   : > { %441 = vst [vmem:[%s198_s14] sm:$0x1] %v440_v5 }
 0x154   : > { %714 = shalt.err (!%p711_p11)
}
 0x155   : > { %s715_s24 = scalar_lea.hbm %s1000_s27, 16  ;;  %s719_s26 = scalar_lea.hbm %s1046_s2, 32 }
 0x156   : > { %p716_p0 = scmp.ne.s32.totalorder %s1000_s27, %s715_s24  ;;  %p720_p3 = scmp.lt.u32.totalorder %s1000_s27, %s1046_s2 }
 0x157   : > { %p721_p5 = scmp.lt.u32.totalorder %s719_s26, %s715_s24  ;;  %p723_p13 = scmp.lt.u32.totalorder %s715_s24, %s1000_s27 }
 0x158   : > { %p717_p4 = pnand %p716_p0, %p1057_p2 }
 0x159   : > { %p722_p6 = por %p721_p5, %p720_p3 }
 0x15a   : > { %p718_p1 = pneg %p717_p4 }
 0x15b   : > { %p724_p12 = por %p723_p13, %p722_p6 }
 0x15d   : > { %p725_p10 = pnand %p724_p12, %p718_p1 }
 0x15f   : > { %728 = shalt.err (!%p725_p10)
}
 0x160   : > { %579 = dma.vmem_to_hbm [thread:$0]  (%p1057_p2), %s1002_s16, 16, %s1000_s27, %s443_s7  }
 0x161 PF: > { %s467_s29 = sand.u32 1, %s759_s9   ;;  %p1058_p7 = scmp.ne.s32.totalorder %s1052_s22, 0 }
 0x162   : > { %p1059_p8 = scmp.ge.s32.totalorder %s771_s12, 2  ;;  %s468_s20 = scalar_lea.sflag [#allocation4], %s467_s29 }
 0x164   : > { %p589_p9 = pnand %p1059_p8, %p1058_p7 }
 0x166   : > { %754 = dma.done.wait (!%p589_p9), %s468_s20, 16  }
 0x167   : > { %756 = vsyncadd (!%p589_p9), %s468_s20, 4294967280  ;;  %p18_p11 = scmp.ge.s32.totalorder %s823_s15, 4   ;;  %s1060_s9 = smov %s763_s10 }
 0x168   : > { %s1061_s10 = smov %s767_s11  ;;  %s1062_s11 = smov %s835_s18 }
 0x169   : > { %s1063_s12 = smov %s823_s15  ;;  %20 = sbr.rel (!%p18_p11) target bundleno = 7 (0x7), region = 86 }
 0x170   :  { %472 = vsyncpa [#allocation3], 1 }
 0x171   :  { %474 = vsyncpa [#allocation3 + $0x1], 1 }
 0x172   :  { %475 = vsyncpa [#allocation6], 1 }
 0x173   :  { %477 = vsyncpa [#allocation6 + $0x1], 1 }
 0x174   :  { %478 = vsyncpa [#allocation4], 1 }
 0x175   :  { %480 = vsyncpa [#allocation4 + $0x1], 1 }

</bundles_post_ra>
